<compile_context>
chip_gen: v7x
topology: tpu7x:2x2x1
jax: 0.10.0
libtpu: 0.0.40
codegen_flags: <defaults>
</compile_context>

<pallas_src>
import jax
import jax.numpy as jnp
from jax.experimental import pallas as pl
from jax.experimental.pallas import tpu as pltpu


def _round_up(x, m):
    return ((x + m - 1) // m) * m


def _choose_batch_tile(B, batch_tile):
    """Pick the batch tile (lane dim of every block).

    Single full-array tile for small batches (block == array is always legal);
    otherwise a multiple of 128 (lane alignment for the feature-major blocks),
    capped at ceil(B/2) so a dual-TC chip (v7x) always gets >= 2 grid steps.
    """
    batch_tile = max(128, _round_up(int(batch_tile), 128))
    if B <= min(batch_tile, 8192):
        return B
    half = _round_up((B + 1) // 2, 128)
    return min(batch_tile, half)


def _make_fused_double_q_kernel(n_layers, compute_dtype):
    """Kernel evaluating BOTH Q MLPs as one fused feature-major MLP.

    refs layout:
      oa_ref                      : (din, TB)  concat([o, a]).T tile, compute_dtype
      (W_ref, b_ref) * n_layers   : W (out, in) compute_dtype; b (out, 1) f32
      out_ref                     : (2, TB)    row 0 = q1, row 1 = q2 (lane-dense)
    """

    def kernel(*refs):
        oa_ref = refs[0]
        params = refs[1:1 + 2 * n_layers]
        out_ref = refs[1 + 2 * n_layers]

        x = oa_ref[...]                                   # (din, TB), compute_dtype
        h = None
        for li in range(n_layers):
            if li > 0:
                # ReLU + accumulate in f32; cast only the MXU operand.
                x = jnp.maximum(h, 0.0).astype(compute_dtype)
            w = params[2 * li][...]                       # (out, in), compute_dtype
            b = params[2 * li + 1][...]                   # (out, 1),  f32
            h = jnp.dot(w, x, preferred_element_type=jnp.float32) + b
        out_ref[...] = h.astype(out_ref.dtype)            # (2, TB) lane-dense store

    return kernel


def init_mlp_params(key, in_dim, hidden_dims, out_dim=1):
    """Deterministic nn.Linear-style (uniform +-1/sqrt(fan_in)) init.

    Weights are stored [in_features, out_features] (transposed w.r.t. PyTorch),
    biases [1, out_features].
    """
    dims = [in_dim] + list(hidden_dims) + [out_dim]
    params = []
    for i in range(len(dims) - 1):
        key, wk, bk = jax.random.split(key, 3)
        bound = 1.0 / float(dims[i]) ** 0.5
        W = jax.random.uniform(wk, (dims[i], dims[i + 1]), jnp.float32, -bound, bound)
        b = jax.random.uniform(bk, (1, dims[i + 1]), jnp.float32, -bound, bound)
        params += [W, b]
    return params, key


def pack_double_q_params(q1_params, q2_params, weight_dtype=jnp.bfloat16):
    """Pack twin MLPs into one fused, feature-major MLP.

    Layer 1 weights are concatenated along the output dim; deeper layers are
    block-diagonal (off-diagonal blocks are exact zeros, so q1/q2 stay fully
    independent). Weights are returned as (out, in) in `weight_dtype`; biases
    as (out, 1) in f32.
    """
    n_layers = len(q1_params) // 2
    packed = []
    for li in range(n_layers):
        W1, b1 = q1_params[2 * li], q1_params[2 * li + 1]
        W2, b2 = q2_params[2 * li], q2_params[2 * li + 1]
        if li == 0:
            W = jnp.concatenate([W1, W2], axis=1)                  # [din, 2h1]
        else:
            z_tr = jnp.zeros((W1.shape[0], W2.shape[1]), W1.dtype)
            z_bl = jnp.zeros((W2.shape[0], W1.shape[1]), W2.dtype)
            W = jnp.concatenate(
                [jnp.concatenate([W1, z_tr], axis=1),
                 jnp.concatenate([z_bl, W2], axis=1)], axis=0)     # [2h_{i-1}, 2h_i]
        b = jnp.concatenate([b1, b2], axis=1)                      # [1, 2h_i]
        packed += [W.T.astype(weight_dtype),                       # (out, in)
                   b.T.astype(jnp.float32)]                        # (out, 1)
    return packed


def double_q_forward(o, a, q1_params, q2_params, *,
                     batch_tile=4096, compute_dtype=jnp.bfloat16):
    """q1, q2 = DoubleQNetwork(o, a); each returned as (B, 1) float32."""
    B, obs_dim = o.shape
    act_dim = a.shape[1]
    din = obs_dim + act_dim
    n_layers = len(q1_params) // 2

    # Fuse the two networks (in training this is done once per parameter update,
    # outside the hot loop).
    packed = pack_double_q_params(q1_params, q2_params, weight_dtype=compute_dtype)

    # Feature-major input slab (din, B): one K=din matmul for layer 1 and a
    # lane-dense (2, B) output with no in-kernel transposes.
    oa_t = jnp.concatenate([o.T, a.T], axis=0).astype(compute_dtype)

    TB = _choose_batch_tile(B, batch_tile)
    n_tiles = pl.cdiv(B, TB)   # ragged last tile handled by Pallas (no jnp.pad)

    kernel = _make_fused_double_q_kernel(n_layers, compute_dtype)

    in_specs = [pl.BlockSpec((din, TB), lambda i: (0, i))]          # batch-tiled input
    in_specs += [pl.BlockSpec(p.shape, lambda i: (0, 0)) for p in packed]  # resident weights
    out_specs = pl.BlockSpec((2, TB), lambda i: (0, i))             # lane-dense output

    flops = 2 * B * sum(int(packed[2 * j].size) for j in range(n_layers))
    bytes_accessed = (int(oa_t.size) * jnp.dtype(compute_dtype).itemsize
                      + sum(int(p.size) * jnp.dtype(p.dtype).itemsize for p in packed)
                      + 2 * B * 4)

    out = pl.pallas_call(
        kernel,
        out_shape=jax.ShapeDtypeStruct((2, B), jnp.float32),
        grid=(n_tiles,),
        in_specs=in_specs,
        out_specs=out_specs,
        compiler_params=pltpu.CompilerParams(
            dimension_semantics=("parallel",),
            vmem_limit_bytes=32 * 1024 * 1024,
        ),
        cost_estimate=pl.CostEstimate(
            flops=flops, transcendentals=0, bytes_accessed=bytes_accessed),
    )(oa_t, *packed)

    q1 = out[0:1, :].T   # (B, 1)
    q2 = out[1:2, :].T   # (B, 1)
    return q1, q2


# ----------------------------- references ---------------------------------


def _mlp_ref(x, params):
    n_layers = len(params) // 2
    h = x
    for li in range(n_layers):
        h = jnp.dot(h, params[2 * li],
                    precision=jax.lax.Precision.HIGHEST) + params[2 * li + 1]
        if li < n_layers - 1:
            h = jnp.maximum(h, 0.0)
    return h


def _reference(o, a, q1_params, q2_params):
    oa = jnp.concatenate([o, a], axis=-1)
    return _mlp_ref(oa, q1_params), _mlp_ref(oa, q2_params)


def _reference_cast(o, a, q1_params, q2_params, dtype):
    """Mirrors the kernel's low-precision-operand / f32-accumulate numerics."""
    def cast_mlp(x, params):
        n_layers = len(params) // 2
        h = x
        for li in range(n_layers):
            W = params[2 * li].astype(dtype).astype(jnp.float32)
            b = params[2 * li + 1]
            h = jnp.dot(h.astype(dtype).astype(jnp.float32), W,
                        precision=jax.lax.Precision.HIGHEST) + b
            if li < n_layers - 1:
                h = jnp.maximum(h, 0.0)
        return h
    oa = jnp.concatenate([o, a], axis=-1)
    return cast_mlp(oa, q1_params), cast_mlp(oa, q2_params)


# --------------------------------- main ------------------------------------


if __name__ == "__main__":
    obs_dim = 12
    act_dim = 4
    hidden_dims = [32, 32]

    key = jax.random.PRNGKey(0)
    q1_params, key = init_mlp_params(key, obs_dim + act_dim, hidden_dims, 1)
    q2_params, key = init_mlp_params(key, obs_dim + act_dim, hidden_dims, 1)

    # Case 1: small batch, single tile, f32 compute path (exact module semantics).
    key, ko, ka = jax.random.split(key, 3)
    o = jax.random.normal(ko, (8, obs_dim), jnp.float32)
    a = jax.random.normal(ka, (8, act_dim), jnp.float32)
    q1, q2 = double_q_forward(o, a, q1_params, q2_params, compute_dtype=jnp.float32)
    jax.block_until_ready((q1, q2))
    r1, r2 = _reference(o, a, q1_params, q2_params)
    assert q1.shape == (8, 1) and q2.shape == (8, 1)
    assert jnp.allclose(q1, r1, atol=1e-3, rtol=1e-3)
    assert jnp.allclose(q2, r2, atol=1e-3, rtol=1e-3)

    # Case 2: multi-tile grid with a ragged last tile (300 rows, TB=128 -> 3 steps),
    # default bf16 MXU operands with f32 accumulation.
    key, ko, ka = jax.random.split(key, 3)
    o2 = jax.random.normal(ko, (300, obs_dim), jnp.float32)
    a2 = jax.random.normal(ka, (300, act_dim), jnp.float32)
    q1b, q2b = double_q_forward(o2, a2, q1_params, q2_params, batch_tile=128)
    jax.block_until_ready((q1b, q2b))
    cb1, cb2 = _reference_cast(o2, a2, q1_params, q2_params, jnp.bfloat16)
    f1, f2 = _reference(o2, a2, q1_params, q2_params)
    assert q1b.shape == (300, 1) and q2b.shape == (300, 1)
    assert jnp.allclose(q1b, cb1, atol=1e-3, rtol=1e-3)   # vs matching bf16 numerics
    assert jnp.allclose(q2b, cb2, atol=1e-3, rtol=1e-3)
    assert jnp.allclose(q1b, f1, atol=5e-2, rtol=5e-2)    # sanity vs pure f32 reference
    assert jnp.allclose(q2b, f2, atol=5e-2, rtol=5e-2)

    print("KERNEL_OK")
</pallas_src>

<mosaic_0001>
module attributes {stable_mosaic.version = 11 : i64} {
  func.func @kernel(%arg0: i32, %arg1: memref<16x8xf32, #tpu.memory_space<vmem>>, %arg2: memref<64x16xf32, #tpu.memory_space<vmem>>, %arg3: memref<64x1xf32, #tpu.memory_space<vmem>>, %arg4: memref<64x64xf32, #tpu.memory_space<vmem>>, %arg5: memref<64x1xf32, #tpu.memory_space<vmem>>, %arg6: memref<2x64xf32, #tpu.memory_space<vmem>>, %arg7: memref<2x1xf32, #tpu.memory_space<vmem>>, %arg8: memref<2x8xf32, #tpu.memory_space<vmem>>) attributes {dimension_semantics = [#tpu.dimension_semantics<parallel>], iteration_bounds = array<i64: 1>, scalar_prefetch = 0 : i64, scratch_operands = 0 : i64, tpu.core_type = #tpu.core_type<tc>, window_params = [{transform_indices = @transform_0, window_bounds = array<i64: 16, 8>}, {pipeline_mode = #tpu.pipeline_mode<synchronous>, transform_indices = @transform_1, window_bounds = array<i64: 64, 16>}, {pipeline_mode = #tpu.pipeline_mode<synchronous>, transform_indices = @transform_2, window_bounds = array<i64: 64, 1>}, {pipeline_mode = #tpu.pipeline_mode<synchronous>, transform_indices = @transform_3, window_bounds = array<i64: 64, 64>}, {pipeline_mode = #tpu.pipeline_mode<synchronous>, transform_indices = @transform_4, window_bounds = array<i64: 64, 1>}, {pipeline_mode = #tpu.pipeline_mode<synchronous>, transform_indices = @transform_5, window_bounds = array<i64: 2, 64>}, {pipeline_mode = #tpu.pipeline_mode<synchronous>, transform_indices = @transform_6, window_bounds = array<i64: 2, 1>}, {transform_indices = @transform_7, window_bounds = array<i64: 2, 8>}]} {
    %c0 = arith.constant 0 : index
    %c0_0 = arith.constant 0 : index
    %0 = vector.load %arg1[%c0, %c0_0] : memref<16x8xf32, #tpu.memory_space<vmem>>, vector<16x8xf32>
    %c0_1 = arith.constant 0 : index
    %c0_2 = arith.constant 0 : index
    %1 = vector.load %arg2[%c0_1, %c0_2] : memref<64x16xf32, #tpu.memory_space<vmem>>, vector<64x16xf32>
    %c0_3 = arith.constant 0 : index
    %c0_4 = arith.constant 0 : index
    %2 = vector.load %arg3[%c0_3, %c0_4] : memref<64x1xf32, #tpu.memory_space<vmem>>, vector<64x1xf32>
    %cst = arith.constant dense<0.000000e+00> : vector<64x8xf32>
    %3 = tpu.matmul %1, %0, %cst {dimension_numbers = #tpu.dot_dimension_numbers<[1], [0], [0], [1], [0, 0, 1, 1], [], []>} : vector<64x16xf32>, vector<16x8xf32>, vector<64x8xf32> -> vector<64x8xf32>
    %4 = vector.broadcast %2 : vector<64x1xf32> to vector<64x8xf32>
    %5 = arith.addf %3, %4 : vector<64x8xf32>
    %cst_5 = arith.constant 0.000000e+00 : f32
    %6 = vector.broadcast %cst_5 : f32 to vector<64x8xf32>
    %7 = arith.maximumf %5, %6 : vector<64x8xf32>
    %c0_6 = arith.constant 0 : index
    %c0_7 = arith.constant 0 : index
    %8 = vector.load %arg4[%c0_6, %c0_7] : memref<64x64xf32, #tpu.memory_space<vmem>>, vector<64x64xf32>
    %c0_8 = arith.constant 0 : index
    %c0_9 = arith.constant 0 : index
    %9 = vector.load %arg5[%c0_8, %c0_9] : memref<64x1xf32, #tpu.memory_space<vmem>>, vector<64x1xf32>
    %cst_10 = arith.constant dense<0.000000e+00> : vector<64x8xf32>
    %10 = tpu.matmul %8, %7, %cst_10 {dimension_numbers = #tpu.dot_dimension_numbers<[1], [0], [0], [1], [0, 0, 1, 1], [], []>} : vector<64x64xf32>, vector<64x8xf32>, vector<64x8xf32> -> vector<64x8xf32>
    %11 = vector.broadcast %9 : vector<64x1xf32> to vector<64x8xf32>
    %12 = arith.addf %10, %11 : vector<64x8xf32>
    %cst_11 = arith.constant 0.000000e+00 : f32
    %13 = vector.broadcast %cst_11 : f32 to vector<64x8xf32>
    %14 = arith.maximumf %12, %13 : vector<64x8xf32>
    %c0_12 = arith.constant 0 : index
    %c0_13 = arith.constant 0 : index
    %15 = vector.load %arg6[%c0_12, %c0_13] : memref<2x64xf32, #tpu.memory_space<vmem>>, vector<2x64xf32>
    %c0_14 = arith.constant 0 : index
    %c0_15 = arith.constant 0 : index
    %16 = vector.load %arg7[%c0_14, %c0_15] : memref<2x1xf32, #tpu.memory_space<vmem>>, vector<2x1xf32>
    %cst_16 = arith.constant dense<0.000000e+00> : vector<2x8xf32>
    %17 = tpu.matmul %15, %14, %cst_16 {dimension_numbers = #tpu.dot_dimension_numbers<[1], [0], [0], [1], [0, 0, 1, 1], [], []>} : vector<2x64xf32>, vector<64x8xf32>, vector<2x8xf32> -> vector<2x8xf32>
    %18 = vector.broadcast %16 : vector<2x1xf32> to vector<2x8xf32>
    %19 = arith.addf %17, %18 : vector<2x8xf32>
    %c0_17 = arith.constant 0 : index
    %c0_18 = arith.constant 0 : index
    %20 = vector.load %arg8[%c0_17, %c0_18] : memref<2x8xf32, #tpu.memory_space<vmem>>, vector<2x8xf32>
    tpu.vector_store %arg8[%c0_17, %c0_18], %19 {strides = array<i32>} : memref<2x8xf32, #tpu.memory_space<vmem>>, vector<2x8xf32>,
    return
  }
  func.func @transform_0(%arg0: i32) -> (i32, i32) {
    %c0_i32 = arith.constant 0 : i32
    %c0_i32_0 = arith.constant 0 : i32
    return %c0_i32, %arg0 : i32, i32
  }
  func.func @transform_1(%arg0: i32) -> (i32, i32) {
    %c0_i32 = arith.constant 0 : i32
    %c0_i32_0 = arith.constant 0 : i32
    %c0_i32_1 = arith.constant 0 : i32
    return %c0_i32, %c0_i32_0 : i32, i32
  }
  func.func @transform_2(%arg0: i32) -> (i32, i32) {
    %c0_i32 = arith.constant 0 : i32
    %c0_i32_0 = arith.constant 0 : i32
    %c0_i32_1 = arith.constant 0 : i32
    return %c0_i32, %c0_i32_0 : i32, i32
  }
  func.func @transform_3(%arg0: i32) -> (i32, i32) {
    %c0_i32 = arith.constant 0 : i32
    %c0_i32_0 = arith.constant 0 : i32
    %c0_i32_1 = arith.constant 0 : i32
    return %c0_i32, %c0_i32_0 : i32, i32
  }
  func.func @transform_4(%arg0: i32) -> (i32, i32) {
    %c0_i32 = arith.constant 0 : i32
    %c0_i32_0 = arith.constant 0 : i32
    %c0_i32_1 = arith.constant 0 : i32
    return %c0_i32, %c0_i32_0 : i32, i32
  }
  func.func @transform_5(%arg0: i32) -> (i32, i32) {
    %c0_i32 = arith.constant 0 : i32
    %c0_i32_0 = arith.constant 0 : i32
    %c0_i32_1 = arith.constant 0 : i32
    return %c0_i32, %c0_i32_0 : i32, i32
  }
  func.func @transform_6(%arg0: i32) -> (i32, i32) {
    %c0_i32 = arith.constant 0 : i32
    %c0_i32_0 = arith.constant 0 : i32
    %c0_i32_1 = arith.constant 0 : i32
    return %c0_i32, %c0_i32_0 : i32, i32
  }
  func.func @transform_7(%arg0: i32) -> (i32, i32) {
    %c0_i32 = arith.constant 0 : i32
    %c0_i32_0 = arith.constant 0 : i32
    return %c0_i32, %arg0 : i32, i32
  }
}

</mosaic_0001>

<bundles_post_ra>
// kernel: tpu_custom_call.1
= control target key start
LH: loop header
LB: loop body
LE: loop exit
PB: predicated region body
PF: predicated region fallthrough
CT: control target
= control target key end

     0   :  { %vm85_vm0 = vcmask 130048   ;;  %v691_v4 = vmov 0   ;;  %s873_s0 = inlined_call_operand.vmem [shape: f32[16,8], index: 0, kind: input, shape index: {}]   ;;  %s874_s1 = inlined_call_operand.vmem [shape: f32[64,16], index: 1, kind: input, shape index: {}]   ;;  %s875_s2 = inlined_call_operand.vmem [shape: f32[64,1], index: 2, kind: input, shape index: {}]   ;;  %s876_s3 = inlined_call_operand.vmem [shape: f32[64,64], index: 3, kind: input, shape index: {}]   ;;  %s877_s4 = inlined_call_operand.vmem [shape: f32[64,1], index: 4, kind: input, shape index: {}]   ;;  %s878_s5 = inlined_call_operand.vmem [shape: f32[2,64], index: 5, kind: input, shape index: {}]   ;;  %s879_s6 = inlined_call_operand.vmem [shape: f32[2,1], index: 6, kind: input, shape index: {}]   ;;  %s880_s7 = inlined_call_operand.hbm [shape: f32[2,8], index: 7, kind: output, shape index: {}]  }
   0x1   :  { %v27_v0 = vld [vmem:[%s873_s0] sm:$0xff]  ;;  %v28_v1 = vld [vmem:[%s873_s0 + $0x8] sm:$0xff]  ;;  %665 = vset.pattern.permute.xlu0 %v691_v4  ;;  %666 = vset.pattern.permute.xlu1 %v691_v4  ;;  %v39_v7 = vld [vmem:[%s875_s2 + $0x10] sm:$0xff] }
   0x2   :  { %v29_v2 = vld [vmem:[%s874_s1] sm:$0xff]  ;;  %v628_v3 = vpack.c.bf16 %v28_v1, %v27_v0  ;;  %v30_v6 = vld [vmem:[%s874_s1 + $0x8] sm:$0xff]  ;;  %v31_v8 = vld [vmem:[%s874_s1 + $0x10] sm:$0xff]  ;;  %57 = vperm.xlu1 %666, %v39_v7  }
   0x3   :  { %569 = vmatprep.mubr.msk.f32.mxu0 %vm85_vm0, %v29_v2  ;;  %v37_v5 = vld [vmem:[%s875_s2] sm:$0xff]  ;;  %v38_v9 = vld [vmem:[%s875_s2 + $0x8] sm:$0xff]  ;;  %v40_v10 = vld [vmem:[%s875_s2 + $0x18] sm:$0xff] }
   0x4   :  { %629 = vmatprep.subr.bf16.mxu0 %v628_v3  ;;  %47 = vperm.xlu0 %665, %v37_v5   ;;  %v32_v11 = vld [vmem:[%s874_s1 + $0x18] sm:$0xff]  ;;  %v33_v12 = vld [vmem:[%s874_s1 + $0x20] sm:$0xff] }
   0x5   :  { %631 = vmatpush3.bf16.msra.mxu0 %v628_v3  ;;  %v41_v13 = vld [vmem:[%s875_s2 + $0x20] sm:$0xff] }
   0x6   :  { %62 = vperm.xlu1 %666, %v40_v10  }
   0x8   :  { %570 = vmatmul.mubr.msk.f32.vlgmr.msra.gmra.mrb[0].mxu0 %vm85_vm0, %v30_v6  ;;  %52 = vperm.xlu0 %665, %v38_v9  }
   0x9   :  { %572 = vmatprep.mubr.msk.f32.mxu0 %vm85_vm0, %v31_v8 }
   0xa   :  { %12 = vsyncpa [#allocation3], 0  ;;  %v42_v14 = vld [vmem:[%s875_s2 + $0x28] sm:$0xff]  ;;  %v35_v16 = vld [vmem:[%s874_s1 + $0x30] sm:$0xff]  ;;  %vm279_vm1 = vcmask 523264   ;;  %v692_v9 = vmov 0.0|0.0  }
   0xb   :  { %v34_v15 = vld [vmem:[%s874_s1 + $0x28] sm:$0xff]  ;;  %v43_v17 = vld [vmem:[%s875_s2 + $0x30] sm:$0xff]  ;;  %72 = vperm.xlu1 %666, %v42_v14   ;;  %v44_v18 = vld [vmem:[%s875_s2 + $0x38] sm:$0xff]  ;;  %648 = vmatprep.subr.bf16.mxu0 %v692_v9  ;;  %vm693_vm2 = vmmov 0   ;;  %v694_v10 = vmov 0.0   ;;  %vm497_vm3 = vcmask 58368  }
   0xc   :  { %573 = vmatmul.mubr.msk.f32.gmra.mrb[2].mxu0 %vm85_vm0, %v32_v11  ;;  %67 = vperm.xlu0 %665, %v41_v13   ;;  %v36_v19 = vld [vmem:[%s874_s1 + $0x38] sm:$0xff]  ;;  %v231_v20 = vld [vmem:[%s877_s4] sm:$0xff]  ;;  %v232_v21 = vld [vmem:[%s877_s4 + $0x8] sm:$0xff]  ;;  %s695_s1 = smov [#allocation2]  }
   0xd   :  { %575 = vmatprep.mubr.msk.f32.mxu0 %vm85_vm0, %v33_v12  ;;  %v233_v22 = vld [vmem:[%s877_s4 + $0x10] sm:$0xff]  ;;  %v234_v23 = vld [vmem:[%s877_s4 + $0x18] sm:$0xff]  ;;  %v235_v24 = vld [vmem:[%s877_s4 + $0x20] sm:$0xff]  ;;  %s505_s18 = sshll.u32 %s695_s1, 4  ;;  %s506_s18 = int_to_ptr.vmem [resolvable:$true] %s505_s18 }
   0xe   :  { %v236_v25 = vld [vmem:[%s877_s4 + $0x28] sm:$0xff]  ;;  %v237_v26 = vld [vmem:[%s877_s4 + $0x30] sm:$0xff]  ;;  %v238_v27 = vld [vmem:[%s877_s4 + $0x38] sm:$0xff]  ;;  %s667_s19 = scalar_lea.vmem %s506_s18, 32  ;;  %p672_p1 = scmp.lt.s32.totalorder %s506_s18, %s506_s18 }
   0xf   :  { %82 = vperm.xlu1 %666, %v44_v18   ;;  %v418_v28 = vld [vmem:[%s879_s6] sm:$0x3]  ;;  %v224_v2 = vld [vmem:[%s876_s3 + $0x8] sm:$0xff]  ;;  %v225_v3 = vld [vmem:[%s876_s3 + $0x10] sm:$0xff]  ;;  %p668_p0 = scmp.ne.s32.totalorder %s506_s18, %s667_s19  ;;  %p673_p2 = scmp.lt.s32.totalorder %s667_s19, %s667_s19 }
  0x10   :  { %576 = vmatmul.mubr.msk.f32.gmra.mrb[4].mxu0 %vm85_vm0, %v34_v15  ;;  %77 = vperm.xlu0 %665, %v43_v17   ;;  %v223_v29 = vld [vmem:[%s876_s3] sm:$0xff]  ;;  %v226_v4 = vld [vmem:[%s876_s3 + $0x18] sm:$0xff]  ;;  %v228_v6 = vld [vmem:[%s876_s3 + $0x28] sm:$0xff] }
  0x11   :  { %578 = vmatprep.mubr.msk.f32.mxu0 %vm85_vm0, %v35_v16  ;;  %597 = vmatprep.mubr.msk.f32.mxu1 %vm279_vm1, %v223_v29  ;;  %v227_v5 = vld [vmem:[%s876_s3 + $0x20] sm:$0xff]  ;;  %v229_v7 = vld [vmem:[%s876_s3 + $0x30] sm:$0xff]  ;;  %v230_v8 = vld [vmem:[%s876_s3 + $0x38] sm:$0xff]  ;;  %p674_p3 = por %p673_p2, %p672_p1 }
  0x13   :  { %246 = vperm.xlu1 %666, %v232_v21   ;;  %p675_p4 = pnand %p674_p3, %p668_p0 }
  0x14   :  { %579 = vmatmul.mubr.msk.f32.gmra.mrb[6].mxu0 %vm85_vm0, %v36_v19  ;;  %241 = vperm.xlu0 %665, %v231_v20  }
  0x15   :  { %625 = vmatprep.mubr.msk.f32.mxu0 %vm693_vm2, %v694_v10 }
  0x17   :  { %256 = vperm.xlu1 %666, %v234_v23  }
  0x18   :  { %251 = vperm.xlu0 %665, %v233_v22  }
  0x1b   :  { %266 = vperm.xlu1 %666, %v236_v25  }
  0x1c   :  { %261 = vperm.xlu0 %665, %v235_v24  }
  0x1f   :  { %276 = vperm.xlu1 %666, %v238_v27  }
  0x20   :  { %271 = vperm.xlu0 %665, %v237_v26  }
  0x24   :  { %421 = vperm.xlu0 %665, %v418_v28  }
  0x81   :  { %v58_v31 = vpop.permute.xlu1 %57 }
  0x83   :  { %v48_v30 = vpop.permute.xlu0 %47 }
  0x85   :  { %v63_v33 = vpop.permute.xlu1 %62 }
  0x87   :  { %v53_v32 = vpop.permute.xlu0 %52 }
  0x8a   :  { %v73_v43 = vpop.permute.xlu1 %72 }
  0x8b   :  { %v68_v46 = vpop.permute.xlu0 %67 }
  0x8e   :  { %v83_v55 = vpop.permute.xlu1 %82 }
  0x8f   :  { %v78_v58 = vpop.permute.xlu0 %77 }
  0x92   :  { %v247_v11 = vpop.permute.xlu1 %246 }
  0x93   :  { %v242_v12 = vpop.permute.xlu0 %241 }
  0x96   :  { %v257_v13 = vpop.permute.xlu1 %256 }
  0x97   :  { %v252_v15 = vpop.permute.xlu0 %251 }
  0x9a   :  { %v267_v24 = vpop.permute.xlu1 %266 }
  0x9b   :  { %v262_v27 = vpop.permute.xlu0 %261 }
  0xdb   :  { %v571_v34 = vpop.f32.mrb[0].mxu0 }
  0xdc   :  { %v182_v35 = vadd.f32 %v571_v34, %v53_v32  ;;  %v176_v36 = vpop.f32.mrb[1].mxu0 }
  0xdd   :  { %v177_v37 = vadd.f32 %v176_v36, %v48_v30  ;;  %v277_v36 = vpop.permute.xlu1 %276 }
  0xde   :  { %v216_v38 = vmax.f32 %v182_v35, 0.0 }
  0xdf   :  { %v215_v39 = vmax.f32 %v177_v37, 0.0  ;;  %v574_v40 = vpop.f32.mrb[2].mxu0 }
  0xe0   :  { %v192_v41 = vadd.f32 %v574_v40, %v63_v33  ;;  %v186_v42 = vpop.f32.mrb[3].mxu0 }
  0xe1   :  { %v187_v44 = vadd.f32 %v186_v42, %v58_v31  ;;  %v632_v45 = vpack.c.bf16 %v216_v38, %v215_v39  ;;  %v272_v39 = vpop.permute.xlu0 %271 }
  0xe2   :  { %v218_v47 = vmax.f32 %v192_v41, 0.0 }
  0xe3   :  { %v217_v48 = vmax.f32 %v187_v44, 0.0  ;;  %v577_v49 = vpop.f32.mrb[4].mxu0  ;;  %633 = vmatprep.subr.bf16.mxu1 %v632_v45 }
  0xe4   :  { %v202_v50 = vadd.f32 %v577_v49, %v73_v43  ;;  %v196_v51 = vpop.f32.mrb[5].mxu0  ;;  %635 = vmatpush3.bf16.msra.mxu1 %v632_v45 }
  0xe5   :  { %v636_v52 = vpack.c.bf16 %v218_v47, %v217_v48  ;;  %v197_v53 = vadd.f32 %v196_v51, %v68_v46  ;;  %v417_v47 = vld [vmem:[%s878_s5] sm:$0x3]  ;;  %v422_v48 = vpop.permute.xlu0 %421 }
  0xe6   :  { %v220_v54 = vmax.f32 %v202_v50, 0.0 }
  0xe7   :  { %v219_v56 = vmax.f32 %v197_v53, 0.0  ;;  %v580_v57 = vpop.f32.mrb[6].mxu0  ;;  %637 = vmatprep.subr.bf16.mxu1 %v636_v52 }
  0xe8   :  { %v212_v59 = vadd.f32 %v580_v57, %v83_v55  ;;  %v206_v60 = vpop.f32.mrb[7].mxu0  ;;  %639 = vmatpush3.bf16.msra.mxu1 %v636_v52 }
  0xe9   :  { %v640_v61 = vpack.c.bf16 %v220_v54, %v219_v56  ;;  %v207_v62 = vadd.f32 %v206_v60, %v78_v58 }
  0xea   :  { %v222_v63 = vmax.f32 %v212_v59, 0.0 }
  0xeb   :  { %v221_v0 = vmax.f32 %v207_v62, 0.0  ;;  %641 = vmatprep.subr.bf16.mxu1 %v640_v61 }
  0xec   :  { %643 = vmatpush3.bf16.msra.mxu1 %v640_v61 }
  0xed   :  { %v644_v1 = vpack.c.bf16 %v222_v63, %v221_v0 }
  0xef   :  { %645 = vmatprep.subr.bf16.mxu1 %v644_v1 }
  0xf0   :  { %647 = vmatpush3.bf16.msra.mxu1 %v644_v1 }
  0xf3   :  { %598 = vmatmul.mubr.msk.f32.vlgmr.msra.gmra.mrb[0].mxu1 %vm279_vm1, %v224_v2 }
  0xf4   :  { %600 = vmatprep.mubr.msk.f32.mxu1 %vm279_vm1, %v225_v3 }
  0xf7   :  { %601 = vmatmul.mubr.msk.f32.gmra.mrb[2].mxu1 %vm279_vm1, %v226_v4 }
  0xf8   :  { %603 = vmatprep.mubr.msk.f32.mxu1 %vm279_vm1, %v227_v5 }
  0xfb   :  { %604 = vmatmul.mubr.msk.f32.gmra.mrb[4].mxu1 %vm279_vm1, %v228_v6 }
  0xfc   :  { %606 = vmatprep.mubr.msk.f32.mxu1 %vm279_vm1, %v229_v7 }
  0xff   :  { %607 = vmatmul.mubr.msk.f32.gmra.mrb[6].mxu1 %vm279_vm1, %v230_v8 }
 0x1c6   :  { %v599_v14 = vpop.f32.mrb[0].mxu1 }
 0x1c7   :  { %v376_v16 = vadd.f32 %v599_v14, %v247_v11  ;;  %v370_v17 = vpop.f32.mrb[1].mxu1 }
 0x1c8   :  { %v371_v18 = vadd.f32 %v370_v17, %v242_v12 }
 0x1c9   :  { %v410_v19 = vmax.f32 %v376_v16, 0.0 }
 0x1ca   :  { %v409_v20 = vmax.f32 %v371_v18, 0.0  ;;  %v602_v21 = vpop.f32.mrb[2].mxu1 }
 0x1cb   :  { %v386_v22 = vadd.f32 %v602_v21, %v257_v13  ;;  %v380_v23 = vpop.f32.mrb[3].mxu1 }
 0x1cc   :  { %v649_v25 = vpack.c.bf16 %v410_v19, %v409_v20  ;;  %v381_v26 = vadd.f32 %v380_v23, %v252_v15 }
 0x1cd   :  { %v412_v28 = vmax.f32 %v386_v22, 0.0 }
 0x1ce   :  { %v411_v29 = vmax.f32 %v381_v26, 0.0  ;;  %v605_v30 = vpop.f32.mrb[4].mxu1  ;;  %650 = vmatpush3.bf16.msra.mxu0 %v649_v25 }
 0x1cf   :  { %v396_v31 = vadd.f32 %v605_v30, %v267_v24  ;;  %v390_v32 = vpop.f32.mrb[5].mxu1  ;;  %651 = vmatprep.subr.bf16.mxu0 %v692_v9 }
 0x1d0   :  { %v652_v33 = vpack.c.bf16 %v412_v28, %v411_v29  ;;  %v391_v34 = vadd.f32 %v390_v32, %v262_v27 }
 0x1d1   :  { %v414_v35 = vmax.f32 %v396_v31, 0.0 }
 0x1d2   :  { %v413_v37 = vmax.f32 %v391_v34, 0.0  ;;  %v608_v38 = vpop.f32.mrb[6].mxu1  ;;  %653 = vmatpush3.bf16.msra.mxu0 %v652_v33 }
 0x1d3   :  { %v406_v40 = vadd.f32 %v608_v38, %v277_v36  ;;  %v400_v41 = vpop.f32.mrb[7].mxu1  ;;  %654 = vmatprep.subr.bf16.mxu0 %v692_v9 }
 0x1d4   :  { %v655_v42 = vpack.c.bf16 %v414_v35, %v413_v37  ;;  %v401_v43 = vadd.f32 %v400_v41, %v272_v39 }
 0x1d5   :  { %v416_v44 = vmax.f32 %v406_v40, 0.0 }
 0x1d6   :  { %v415_v45 = vmax.f32 %v401_v43, 0.0  ;;  %656 = vmatpush3.bf16.msra.mxu0 %v655_v42 }
 0x1d7   :  { %657 = vmatprep.subr.bf16.mxu0 %v692_v9 }
 0x1d8   :  { %v658_v46 = vpack.c.bf16 %v416_v44, %v415_v45 }
 0x1da   :  { %659 = vmatpush3.bf16.msra.mxu0 %v658_v46 }
 0x1dd   :  { %626 = vmatmul.mubr.msk.f32.vlgmr.msra.gmra.mrb[8].mxu0 %vm279_vm1, %v417_v47 }
 0x2b0   :  { %v493_v49 = vpop.f32.mrb[8].mxu0 }
 0x2b1   :  { %v494_v50 = vadd.f32 %v493_v49, %v422_v48  ;;  %v627_v51 = vpop.f32.mrb[9].mxu0 }
 0x2b3   :  { %498 = vst.msk [vmem:[#allocation2] sm:$0x3] %vm497_vm3, %v494_v50 }
 0x2b4   :  { %678 = shalt.err (!%p675_p4)
}
 0x2b5   :  { %s679_s21 = scalar_lea.hbm %s880_s7, 32 }
 0x2b6   :  { %p680_p5 = scmp.ne.s32.totalorder %s880_s7, %s679_s21  ;;  %p683_p6 = scmp.lt.u32.totalorder %s679_s21, %s880_s7 }
 0x2b8   :  { %p685_p7 = pnand %p683_p6, %p680_p5 }
 0x2ba   :  { %688 = shalt.err (!%p685_p7)
}
 0x2bb   :  { %508 = dma.vmem_to_hbm [thread:$0]  %s506_s18, 32, %s880_s7, [#allocation3]  }
 0x2bc   :  { %689 = dma.done.wait [#allocation3], 32  }
 0x2bd   :  { %690 = vsyncadd [#allocation3], 4294967264 }
 0x2be   :  { %512 = vsyncpa [#allocation3], 1 }

</bundles_post_ra>
